<compile_context>
chip_gen: v6e
topology: v6e:2x2x1
jax: 0.10.0
libtpu: 0.0.40
codegen_flags: <defaults>
</compile_context>

<pallas_src>
import functools

import jax
import jax.numpy as jnp
import numpy as np
from jax import lax
from jax.experimental import pallas as pl
from jax.experimental.pallas import tpu as pltpu


# ----------------------------------------------------------------------------
# Fused kernel: NLSTM_layer LSTM layers + last-valid-step select + L2 normalize
# ----------------------------------------------------------------------------
def encoder_fused_kernel(nlayers, maxl_ref, xp0_ref, lens_ref, *rest):
    # maxl_ref : (1,)        int32 SMEM (scalar prefetch) -- max(L0), loop bound
    # xp0_ref  : (T, bt, 4H) f32   embedding folded into layer-0 projection
    # lens_ref : (bt, 1)     int32 L0 - 1
    # rest     : w_hh_0, then (w_ih_l, w_hh_l, b_l) for l = 1..nlayers-1,
    #            then z_ref, seq_scr, xproj_scr
    #   w_ih_l : (H, 4H) bf16   gate columns permuted to (i, f, o, g)
    #   w_hh_l : (H, 4H) bf16   same permutation
    #   b_l    : (1, 4H) f32    (b_ih + b_hh), same permutation
    # z_ref    : (bt, H)     f32 output (L2-normalized last-valid-step hidden)
    # seq_scr  : (T, bt, H)  f32 VMEM scratch (inter-layer hidden sequence)
    # xproj_scr: (T, bt, 4H) f32 VMEM scratch (hoisted input projection, l >= 1)
    n_w = 1 + 3 * (nlayers - 1)
    wrefs = rest[:n_w]
    z_ref = rest[n_w]
    seq_scr = rest[n_w + 1]
    xproj_scr = rest[n_w + 2]

    T, bt, _ = xp0_ref.shape
    H = z_ref.shape[1]

    maxl = maxl_ref[0]                       # dynamic bound: t >= max(L0) is dead work
    lm1 = lens_ref[...]                      # (bt, 1), loaded once
    zeros = jnp.zeros((bt, H), jnp.float32)

    # Rows t >= max(L0) of seq_scr are never written by the bounded time loop;
    # zero them so the next layer's hoisted projection reads deterministic
    # (dead) values instead of stale VMEM.
    seq_scr[...] = jnp.zeros(seq_scr.shape, seq_scr.dtype)

    z = zeros
    for l in range(nlayers):
        last = l == nlayers - 1
        if l == 0:
            # Layer-0 input projection was folded into the gathered table:
            # the per-step pre-activation is simply xp0_ref[t].
            w_hh = wrefs[0][...]
            xp_ref = xp0_ref
        else:
            base = 1 + 3 * (l - 1)
            w_ih = wrefs[base][...]
            w_hh = wrefs[base + 1][...]
            b = wrefs[base + 2][...]
            # Non-recurrent projection hoisted out of the serial time loop and
            # stored in VMEM scratch (not held as one large live value).
            inp = seq_scr[...].astype(jnp.bfloat16).reshape(T * bt, H)
            xproj_scr[...] = (
                jnp.dot(inp, w_ih, preferred_element_type=jnp.float32) + b
            ).reshape(T, bt, 4 * H)
            xp_ref = xproj_scr

        # TODO(synk): hold w_hh resident in the MXU across the time loop
        # (pltpu.matmul_push_rhs / matmul_acc_lhs) and wavefront-schedule the
        # layers (layer l step t || layer l+1 step t-1) to further shorten the
        # latency-bound serial critical path.
        def step(t, carry, w_hh=w_hh, xp_ref=xp_ref, last=last):
            h, c, z = carry
            gates = xp_ref[t] + jnp.dot(h.astype(jnp.bfloat16), w_hh,
                                        preferred_element_type=jnp.float32)
            # gate layout (i, f, o | g): one sigmoid over 3H lanes, one tanh over H
            sig = jax.nn.sigmoid(gates[:, :3 * H])
            g = jnp.tanh(gates[:, 3 * H:])
            i_g = sig[:, :H]
            f_g = sig[:, H:2 * H]
            o_g = sig[:, 2 * H:3 * H]
            c = f_g * c + i_g * g
            h = o_g * jnp.tanh(c)
            if last:
                z = jnp.where(lm1 == t, h, z)      # fused last-valid-step select
            else:
                seq_scr[t] = h                     # feed the next layer via VMEM
            return (h, c, z)

        _, _, z = lax.fori_loop(0, maxl, step, (zeros, zeros, z))

    # F.normalize(p=2, dim=1): z / max(||z||, 1e-12) == z * rsqrt(max(ssq, 1e-24))
    ssq = jnp.sum(z * z, axis=1, keepdims=True)
    z_ref[...] = z * lax.rsqrt(jnp.maximum(ssq, 1e-24))


def _permute_gates(w, H):
    # PyTorch gate order (i, f, g, o)  ->  kernel order (i, f, o, g), last axis.
    return jnp.concatenate(
        [w[..., :2 * H], w[..., 3 * H:4 * H], w[..., 2 * H:3 * H]], axis=-1)


# ----------------------------------------------------------------------------
# Full forward: table gather + transpose as XLA glue, everything else fused
# ----------------------------------------------------------------------------
@jax.jit
def encoder_forward(params, X0, L0):
    B, T = X0.shape
    nlayers = len(params["lstm"])
    H = params["lstm"][0]["w_hh_T"].shape[0]

    # Batch padding / tiling: sublane-pad to 8; tile large batches at 256 rows
    # per grid step (parallel grid axis -> pipelining + both TCs on v7x).
    Bp = max(8, -(-B // 8) * 8)
    if Bp > 256:
        bt = 256
        Bp = -(-Bp // 256) * 256
    else:
        bt = Bp

    # Fold Embedding + layer-0 input projection into one tiny f32 table:
    #   E[X0] @ W_ih0 + b0  ==  (E @ W_ih0 + b0)[X0]
    l0 = params["lstm"][0]
    table = _permute_gates(
        params["embedding"] @ l0["w_ih_T"] + l0["b"], H)       # (Nfea, 4H) f32
    xp0 = jnp.transpose(table[X0], (1, 0, 2))                  # (T, B, 4H) f32
    xp0 = jnp.pad(xp0, ((0, 0), (0, Bp - B), (0, 0)))

    lens_m1 = (L0.astype(jnp.int32) - 1).reshape(B, 1)
    lens_m1 = jnp.pad(lens_m1, ((0, Bp - B), (0, 0)))
    maxl = jnp.max(L0).astype(jnp.int32).reshape(1)            # scalar prefetch

    # Weight operands: w_hh_0, then (w_ih_l, w_hh_l, b_l) for l >= 1.
    # Constant index_maps -> weights stay VMEM-resident across grid steps.
    const2d = lambda i, m: (0, 0)
    flat_w = [_permute_gates(l0["w_hh_T"], H).astype(jnp.bfloat16)]
    w_specs = [pl.BlockSpec((H, 4 * H), const2d)]
    for layer in params["lstm"][1:]:
        flat_w.append(_permute_gates(layer["w_ih_T"], H).astype(jnp.bfloat16))
        flat_w.append(_permute_gates(layer["w_hh_T"], H).astype(jnp.bfloat16))
        flat_w.append(_permute_gates(layer["b"], H))           # bias stays f32
        w_specs += [pl.BlockSpec((H, 4 * H), const2d),
                    pl.BlockSpec((H, 4 * H), const2d),
                    pl.BlockSpec((1, 4 * H), const2d)]

    # Explicit VMEM budget (input double-buffer + scratch + output + headroom),
    # kept well under v7x's 64 MiB physical VMEM.
    vmem_bytes = 4 * (2 * T * bt * 4 * H      # xp0 block (double-buffered)
                      + T * bt * 4 * H        # xproj scratch
                      + T * bt * H            # inter-layer scratch
                      + 2 * bt * H)           # output block
    vmem_bytes = min(vmem_bytes + (16 << 20), 48 << 20)

    z = pl.pallas_call(
        functools.partial(encoder_fused_kernel, nlayers),
        out_shape=jax.ShapeDtypeStruct((Bp, H), jnp.float32),
        grid_spec=pltpu.PrefetchScalarGridSpec(
            num_scalar_prefetch=1,
            grid=(Bp // bt,),
            in_specs=[pl.BlockSpec((T, bt, 4 * H), lambda i, m: (0, i, 0)),
                      pl.BlockSpec((bt, 1), lambda i, m: (i, 0))] + w_specs,
            out_specs=pl.BlockSpec((bt, H), lambda i, m: (i, 0)),
            scratch_shapes=[pltpu.VMEM((T, bt, H), jnp.float32),
                            pltpu.VMEM((T, bt, 4 * H), jnp.float32)]),
        compiler_params=pltpu.CompilerParams(
            dimension_semantics=("parallel",),
            vmem_limit_bytes=vmem_bytes),
    )(maxl, xp0, lens_m1, *flat_w)
    return z[:B]


# ----------------------------------------------------------------------------
# Parameter construction (deterministic, synthetic — no checkpoint load)
# ----------------------------------------------------------------------------
def init_params(key, para):
    Nfea = para["Nfea"]
    H = para["hidden_dim"]
    nlayers = para["NLSTM_layer"]
    keys = jax.random.split(key, 1 + 4 * nlayers)
    params = {"embedding": jax.random.normal(keys[0], (Nfea, Nfea), jnp.float32)}
    # TODO(synk): torch uses orthogonal init for >=2D LSTM params; deterministic
    # gaussian init is used here since only forward semantics are required.
    layers = []
    for l in range(nlayers):
        in_dim = Nfea if l == 0 else H
        k0, k1, k2, k3 = keys[1 + 4 * l:1 + 4 * (l + 1)]
        w_ih = jax.random.normal(k0, (4 * H, in_dim), jnp.float32) * 0.1
        w_hh = jax.random.normal(k1, (4 * H, H), jnp.float32) * 0.1
        b_ih = jax.random.normal(k2, (4 * H,), jnp.float32) * 0.1
        b_hh = jax.random.normal(k3, (4 * H,), jnp.float32) * 0.1
        layers.append({
            "w_ih_T": w_ih.T,                             # (in_dim, 4H), torch order
            "w_hh_T": w_hh.T,                             # (H, 4H), torch order
            "b": (b_ih + b_hh).reshape(1, 4 * H),         # (1, 4H)
        })
    params["lstm"] = layers
    return params


# ----------------------------------------------------------------------------
# Pure-JAX f32 reference (torch gate order, no permutation) for correctness
# ----------------------------------------------------------------------------
def encoder_forward_ref(params, X0, L0):
    X = params["embedding"][X0].astype(jnp.float32)       # (B, T, F)
    x_seq = jnp.transpose(X, (1, 0, 2))                   # (T, B, F)
    B = X0.shape[0]
    H = params["lstm"][0]["w_hh_T"].shape[0]
    for layer in params["lstm"]:
        def step(carry, x_t, layer=layer):
            h, c = carry
            gates = x_t @ layer["w_ih_T"] + h @ layer["w_hh_T"] + layer["b"]
            i = jax.nn.sigmoid(gates[:, :H])
            f = jax.nn.sigmoid(gates[:, H:2 * H])
            g = jnp.tanh(gates[:, 2 * H:3 * H])
            o = jax.nn.sigmoid(gates[:, 3 * H:])
            c = f * c + i * g
            h = o * jnp.tanh(c)
            return (h, c), h
        zeros = jnp.zeros((B, H), jnp.float32)
        _, x_seq = lax.scan(step, (zeros, zeros), x_seq)
    out = jnp.transpose(x_seq, (1, 0, 2))                 # (B, T, H)
    idx = (L0.astype(jnp.int32) - 1)[:, None, None]
    z = jnp.take_along_axis(out, jnp.broadcast_to(idx, (B, 1, H)), axis=1)[:, 0, :]
    nrm = jnp.sqrt(jnp.sum(z * z, axis=1, keepdims=True))
    return z / jnp.maximum(nrm, 1e-12)


if __name__ == "__main__":
    para = {"Nseq": 8, "Nfea": 16, "hidden_dim": 32, "NLSTM_layer": 2}
    B = 4

    key = jax.random.PRNGKey(0)
    k_param, k_x, k_l = jax.random.split(key, 3)
    params = init_params(k_param, para)

    X0 = jax.random.randint(k_x, (B, para["Nseq"]), 0, para["Nfea"], dtype=jnp.int32)
    L0 = jax.random.randint(k_l, (B,), 1, para["Nseq"] + 1, dtype=jnp.int32)

    Z = encoder_forward(params, X0, L0)
    Z = jax.block_until_ready(Z)

    Z_ref = jax.block_until_ready(encoder_forward_ref(params, X0, L0))
    # 2e-2 tolerance: kernel uses bf16 matmul operands (f32 accumulation),
    # reference is pure f32.
    np.testing.assert_allclose(np.asarray(Z), np.asarray(Z_ref), rtol=2e-2, atol=2e-2)

    assert Z.shape == (B, para["hidden_dim"])
    print("KERNEL_OK")
</pallas_src>

<mosaic_0001>
module attributes {stable_mosaic.version = 11 : i64} {
  func.func @encoder_fused_kernel(%arg0: i32, %arg1: memref<1xi32, #tpu.memory_space<smem>>, %arg2: memref<8x8x128xf32, #tpu.memory_space<vmem>>, %arg3: memref<8x1xi32, #tpu.memory_space<vmem>>, %arg4: memref<32x128xbf16, #tpu.memory_space<vmem>>, %arg5: memref<32x128xbf16, #tpu.memory_space<vmem>>, %arg6: memref<32x128xbf16, #tpu.memory_space<vmem>>, %arg7: memref<1x128xf32, #tpu.memory_space<vmem>>, %arg8: memref<8x32xf32, #tpu.memory_space<vmem>>, %arg9: memref<8x8x32xf32, #tpu.memory_space<vmem>>, %arg10: memref<8x8x128xf32, #tpu.memory_space<vmem>>) attributes {dimension_semantics = [#tpu.dimension_semantics<parallel>], iteration_bounds = array<i64: 1>, scalar_prefetch = 1 : i64, scratch_operands = 2 : i64, tpu.core_type = #tpu.core_type<tc>, window_params = [{transform_indices = @transform_0, window_bounds = array<i64: 8, 8, 128>}, {transform_indices = @transform_1, window_bounds = array<i64: 8, 1>}, {pipeline_mode = #tpu.pipeline_mode<synchronous>, transform_indices = @transform_2, window_bounds = array<i64: 32, 128>}, {pipeline_mode = #tpu.pipeline_mode<synchronous>, transform_indices = @transform_3, window_bounds = array<i64: 32, 128>}, {pipeline_mode = #tpu.pipeline_mode<synchronous>, transform_indices = @transform_4, window_bounds = array<i64: 32, 128>}, {pipeline_mode = #tpu.pipeline_mode<synchronous>, transform_indices = @transform_5, window_bounds = array<i64: 1, 128>}, {transform_indices = @transform_6, window_bounds = array<i64: 8, 32>}]} {
    %c0 = arith.constant 0 : index
    %0 = memref.load %arg1[%c0] : memref<1xi32, #tpu.memory_space<smem>>
    %c0_0 = arith.constant 0 : index
    %c0_1 = arith.constant 0 : index
    %1 = vector.load %arg3[%c0_0, %c0_1] : memref<8x1xi32, #tpu.memory_space<vmem>>, vector<8x1xi32>
    %cst = arith.constant 0.000000e+00 : f32
    %2 = vector.broadcast %cst : f32 to vector<8x32xf32>
    %cst_2 = arith.constant 0.000000e+00 : f32
    %3 = vector.broadcast %cst_2 : f32 to vector<8x8x32xf32>
    %c0_3 = arith.constant 0 : index
    %c0_4 = arith.constant 0 : index
    %c0_5 = arith.constant 0 : index
    %4 = vector.load %arg9[%c0_3, %c0_4, %c0_5] : memref<8x8x32xf32, #tpu.memory_space<vmem>>, vector<8x8x32xf32>
    tpu.vector_store %arg9[%c0_3, %c0_4, %c0_5], %3 {strides = array<i32>} : memref<8x8x32xf32, #tpu.memory_space<vmem>>, vector<8x8x32xf32>,
    %c0_6 = arith.constant 0 : index
    %c0_7 = arith.constant 0 : index
    %5 = vector.load %arg4[%c0_6, %c0_7] : memref<32x128xbf16, #tpu.memory_space<vmem>>, vector<32x128xbf16>
    %c0_i32 = arith.constant 0 : i32
    %6 = arith.subi %0, %c0_i32 : i32
    %7 = arith.addi %c0_i32, %6 : i32
    %c1_i32 = arith.constant 1 : i32
    %8:2 = scf.for %arg11 = %c0_i32 to %7 step %c1_i32 iter_args(%arg12 = %2, %arg13 = %2) -> (vector<8x32xf32>, vector<8x32xf32>)  : i32 {
      %32 = arith.index_cast %arg11 : i32 to index
      %c0_27 = arith.constant 0 : index
      %c0_28 = arith.constant 0 : index
      %33 = vector.load %arg2[%32, %c0_27, %c0_28] : memref<8x8x128xf32, #tpu.memory_space<vmem>>, vector<1x8x128xf32>
      %34 = vector.shape_cast %33 : vector<1x8x128xf32> to vector<8x128xf32>
      %35 = arith.truncf %arg12 : vector<8x32xf32> to vector<8x32xbf16>
      %cst_29 = arith.constant dense<0.000000e+00> : vector<8x128xf32>
      %36 = tpu.matmul %35, %5, %cst_29 {dimension_numbers = #tpu.dot_dimension_numbers<[1], [0], [0], [1], [0, 0, 1, 1], [], []>} : vector<8x32xbf16>, vector<32x128xbf16>, vector<8x128xf32> -> vector<8x128xf32>
      %37 = arith.addf %34, %36 : vector<8x128xf32>
      %38 = vector.extract_strided_slice %37 {offsets = [0, 0], sizes = [8, 96], strides = [1, 1]} : vector<8x128xf32> to vector<8x96xf32>
      %39 = arith.negf %38 : vector<8x96xf32>
      %40 = math.exp %39 : vector<8x96xf32>
      %cst_30 = arith.constant 1.000000e+00 : f32
      %41 = vector.broadcast %cst_30 : f32 to vector<8x96xf32>
      %42 = arith.addf %41, %40 : vector<8x96xf32>
      %43 = arith.divf %41, %42 : vector<8x96xf32>
      %44 = vector.extract_strided_slice %37 {offsets = [0, 96], sizes = [8, 32], strides = [1, 1]} : vector<8x128xf32> to vector<8x32xf32>
      %45 = math.tanh %44 : vector<8x32xf32>
      %46 = vector.extract_strided_slice %43 {offsets = [0, 0], sizes = [8, 32], strides = [1, 1]} : vector<8x96xf32> to vector<8x32xf32>
      %47 = vector.extract_strided_slice %43 {offsets = [0, 32], sizes = [8, 32], strides = [1, 1]} : vector<8x96xf32> to vector<8x32xf32>
      %48 = vector.extract_strided_slice %43 {offsets = [0, 64], sizes = [8, 32], strides = [1, 1]} : vector<8x96xf32> to vector<8x32xf32>
      %49 = arith.mulf %47, %arg13 : vector<8x32xf32>
      %50 = arith.mulf %46, %45 : vector<8x32xf32>
      %51 = arith.addf %49, %50 : vector<8x32xf32>
      %52 = math.tanh %51 : vector<8x32xf32>
      %53 = arith.mulf %48, %52 : vector<8x32xf32>
      %54 = arith.index_cast %arg11 : i32 to index
      %c0_31 = arith.constant 0 : index
      %c0_32 = arith.constant 0 : index
      %55 = vector.load %arg9[%54, %c0_31, %c0_32] : memref<8x8x32xf32, #tpu.memory_space<vmem>>, vector<1x8x32xf32>
      %56 = vector.shape_cast %55 : vector<1x8x32xf32> to vector<8x32xf32>
      %57 = vector.shape_cast %53 : vector<8x32xf32> to vector<1x8x32xf32>
      tpu.vector_store %arg9[%54, %c0_31, %c0_32], %57 {strides = array<i32>} : memref<8x8x32xf32, #tpu.memory_space<vmem>>, vector<1x8x32xf32>,
      scf.yield %53, %51 : vector<8x32xf32>, vector<8x32xf32>
    }
    %c0_8 = arith.constant 0 : index
    %c0_9 = arith.constant 0 : index
    %9 = vector.load %arg5[%c0_8, %c0_9] : memref<32x128xbf16, #tpu.memory_space<vmem>>, vector<32x128xbf16>
    %c0_10 = arith.constant 0 : index
    %c0_11 = arith.constant 0 : index
    %10 = vector.load %arg6[%c0_10, %c0_11] : memref<32x128xbf16, #tpu.memory_space<vmem>>, vector<32x128xbf16>
    %c0_12 = arith.constant 0 : index
    %c0_13 = arith.constant 0 : index
    %11 = vector.load %arg7[%c0_12, %c0_13] : memref<1x128xf32, #tpu.memory_space<vmem>>, vector<1x128xf32>
    %c0_14 = arith.constant 0 : index
    %c0_15 = arith.constant 0 : index
    %c0_16 = arith.constant 0 : index
    %12 = vector.load %arg9[%c0_14, %c0_15, %c0_16] : memref<8x8x32xf32, #tpu.memory_space<vmem>>, vector<8x8x32xf32>
    %13 = arith.truncf %12 : vector<8x8x32xf32> to vector<8x8x32xbf16>
    %14 = vector.shape_cast %13 : vector<8x8x32xbf16> to vector<64x32xbf16>
    %cst_17 = arith.constant dense<0.000000e+00> : vector<64x128xf32>
    %15 = tpu.matmul %14, %9, %cst_17 {dimension_numbers = #tpu.dot_dimension_numbers<[1], [0], [0], [1], [0, 0, 1, 1], [], []>} : vector<64x32xbf16>, vector<32x128xbf16>, vector<64x128xf32> -> vector<64x128xf32>
    %16 = vector.broadcast %11 : vector<1x128xf32> to vector<64x128xf32>
    %17 = arith.addf %15, %16 : vector<64x128xf32>
    %18 = vector.shape_cast %17 : vector<64x128xf32> to vector<8x8x128xf32>
    %c0_18 = arith.constant 0 : index
    %c0_19 = arith.constant 0 : index
    %c0_20 = arith.constant 0 : index
    %19 = vector.load %arg10[%c0_18, %c0_19, %c0_20] : memref<8x8x128xf32, #tpu.memory_space<vmem>>, vector<8x8x128xf32>
    tpu.vector_store %arg10[%c0_18, %c0_19, %c0_20], %18 {strides = array<i32>} : memref<8x8x128xf32, #tpu.memory_space<vmem>>, vector<8x8x128xf32>,
    %c0_i32_21 = arith.constant 0 : i32
    %20 = arith.subi %0, %c0_i32_21 : i32
    %21 = arith.addi %c0_i32_21, %20 : i32
    %c1_i32_22 = arith.constant 1 : i32
    %22:3 = scf.for %arg11 = %c0_i32_21 to %21 step %c1_i32_22 iter_args(%arg12 = %2, %arg13 = %2, %arg14 = %2) -> (vector<8x32xf32>, vector<8x32xf32>, vector<8x32xf32>)  : i32 {
      %32 = arith.index_cast %arg11 : i32 to index
      %c0_27 = arith.constant 0 : index
      %c0_28 = arith.constant 0 : index
      %33 = vector.load %arg10[%32, %c0_27, %c0_28] : memref<8x8x128xf32, #tpu.memory_space<vmem>>, vector<1x8x128xf32>
      %34 = vector.shape_cast %33 : vector<1x8x128xf32> to vector<8x128xf32>
      %35 = arith.truncf %arg12 : vector<8x32xf32> to vector<8x32xbf16>
      %cst_29 = arith.constant dense<0.000000e+00> : vector<8x128xf32>
      %36 = tpu.matmul %35, %10, %cst_29 {dimension_numbers = #tpu.dot_dimension_numbers<[1], [0], [0], [1], [0, 0, 1, 1], [], []>} : vector<8x32xbf16>, vector<32x128xbf16>, vector<8x128xf32> -> vector<8x128xf32>
      %37 = arith.addf %34, %36 : vector<8x128xf32>
      %38 = vector.extract_strided_slice %37 {offsets = [0, 0], sizes = [8, 96], strides = [1, 1]} : vector<8x128xf32> to vector<8x96xf32>
      %39 = arith.negf %38 : vector<8x96xf32>
      %40 = math.exp %39 : vector<8x96xf32>
      %cst_30 = arith.constant 1.000000e+00 : f32
      %41 = vector.broadcast %cst_30 : f32 to vector<8x96xf32>
      %42 = arith.addf %41, %40 : vector<8x96xf32>
      %43 = arith.divf %41, %42 : vector<8x96xf32>
      %44 = vector.extract_strided_slice %37 {offsets = [0, 96], sizes = [8, 32], strides = [1, 1]} : vector<8x128xf32> to vector<8x32xf32>
      %45 = math.tanh %44 : vector<8x32xf32>
      %46 = vector.extract_strided_slice %43 {offsets = [0, 0], sizes = [8, 32], strides = [1, 1]} : vector<8x96xf32> to vector<8x32xf32>
      %47 = vector.extract_strided_slice %43 {offsets = [0, 32], sizes = [8, 32], strides = [1, 1]} : vector<8x96xf32> to vector<8x32xf32>
      %48 = vector.extract_strided_slice %43 {offsets = [0, 64], sizes = [8, 32], strides = [1, 1]} : vector<8x96xf32> to vector<8x32xf32>
      %49 = arith.mulf %47, %arg13 : vector<8x32xf32>
      %50 = arith.mulf %46, %45 : vector<8x32xf32>
      %51 = arith.addf %49, %50 : vector<8x32xf32>
      %52 = math.tanh %51 : vector<8x32xf32>
      %53 = arith.mulf %48, %52 : vector<8x32xf32>
      %54 = vector.broadcast %arg11 : i32 to vector<8x1xi32>
      %55 = arith.cmpi eq, %1, %54 : vector<8x1xi32>
      %56 = vector.shape_cast %55 : vector<8x1xi1> to vector<8x1xi1>
      %57 = vector.broadcast %56 : vector<8x1xi1> to vector<8x32xi1>
      %58 = arith.select %57, %53, %arg14 : vector<8x32xi1>, vector<8x32xf32>
      scf.yield %53, %51, %58 : vector<8x32xf32>, vector<8x32xf32>, vector<8x32xf32>
    }
    %23 = arith.mulf %22#2, %22#2 : vector<8x32xf32>
    %cst_23 = arith.constant dense<0.000000e+00> : vector<8xf32>
    %24 = vector.multi_reduction <add>, %23, %cst_23 [1] : vector<8x32xf32> to vector<8xf32>
    %25 = vector.shape_cast %24 : vector<8xf32> to vector<8x1xf32>
    %cst_24 = arith.constant 1.000000e-24 : f32
    %26 = vector.broadcast %cst_24 : f32 to vector<8x1xf32>
    %27 = arith.maximumf %25, %26 : vector<8x1xf32>
    %28 = math.rsqrt %27 : vector<8x1xf32>
    %29 = vector.broadcast %28 : vector<8x1xf32> to vector<8x32xf32>
    %30 = arith.mulf %22#2, %29 : vector<8x32xf32>
    %c0_25 = arith.constant 0 : index
    %c0_26 = arith.constant 0 : index
    %31 = vector.load %arg8[%c0_25, %c0_26] : memref<8x32xf32, #tpu.memory_space<vmem>>, vector<8x32xf32>
    tpu.vector_store %arg8[%c0_25, %c0_26], %30 {strides = array<i32>} : memref<8x32xf32, #tpu.memory_space<vmem>>, vector<8x32xf32>,
    return
  }
  func.func @transform_0(%arg0: i32, %arg1: memref<1xi32, #tpu.memory_space<smem>>) -> (i32, i32, i32) {
    %c0_i32 = arith.constant 0 : i32
    %c0_i32_0 = arith.constant 0 : i32
    %c0_i32_1 = arith.constant 0 : i32
    return %c0_i32, %arg0, %c0_i32_0 : i32, i32, i32
  }
  func.func @transform_1(%arg0: i32, %arg1: memref<1xi32, #tpu.memory_space<smem>>) -> (i32, i32) {
    %c0_i32 = arith.constant 0 : i32
    %c0_i32_0 = arith.constant 0 : i32
    return %arg0, %c0_i32 : i32, i32
  }
  func.func @transform_2(%arg0: i32, %arg1: memref<1xi32, #tpu.memory_space<smem>>) -> (i32, i32) {
    %c0_i32 = arith.constant 0 : i32
    %c0_i32_0 = arith.constant 0 : i32
    %c0_i32_1 = arith.constant 0 : i32
    return %c0_i32, %c0_i32_0 : i32, i32
  }
  func.func @transform_3(%arg0: i32, %arg1: memref<1xi32, #tpu.memory_space<smem>>) -> (i32, i32) {
    %c0_i32 = arith.constant 0 : i32
    %c0_i32_0 = arith.constant 0 : i32
    %c0_i32_1 = arith.constant 0 : i32
    return %c0_i32, %c0_i32_0 : i32, i32
  }
  func.func @transform_4(%arg0: i32, %arg1: memref<1xi32, #tpu.memory_space<smem>>) -> (i32, i32) {
    %c0_i32 = arith.constant 0 : i32
    %c0_i32_0 = arith.constant 0 : i32
    %c0_i32_1 = arith.constant 0 : i32
    return %c0_i32, %c0_i32_0 : i32, i32
  }
  func.func @transform_5(%arg0: i32, %arg1: memref<1xi32, #tpu.memory_space<smem>>) -> (i32, i32) {
    %c0_i32 = arith.constant 0 : i32
    %c0_i32_0 = arith.constant 0 : i32
    %c0_i32_1 = arith.constant 0 : i32
    return %c0_i32, %c0_i32_0 : i32, i32
  }
  func.func @transform_6(%arg0: i32, %arg1: memref<1xi32, #tpu.memory_space<smem>>) -> (i32, i32) {
    %c0_i32 = arith.constant 0 : i32
    %c0_i32_0 = arith.constant 0 : i32
    return %arg0, %c0_i32 : i32, i32
  }
}

</mosaic_0001>

<bundles_post_ra>
// kernel: encoder_forward.1
= control target key start
LH: loop header
LB: loop body
LE: loop exit
PB: predicated region body
PF: predicated region fallthrough
CT: control target
= control target key end

     0   :  { %vm28_vm0 = vcmask 261120   ;;  %v677_v1 = vmov 0.0   ;;  %s876_s0 = inlined_call_operand.<no memory space> [shape: s32[1], index: 0, kind: input, shape index: {}]   ;;  %s877_s1 = inlined_call_operand.vmem [shape: f32[8,8,128], index: 1, kind: input, shape index: {}]   ;;  %s878_s2 = inlined_call_operand.vmem [shape: s32[8,1], index: 2, kind: input, shape index: {}]   ;;  %s879_s3 = inlined_call_operand.vmem [shape: bf16[32,128], index: 3, kind: input, shape index: {}]   ;;  %s880_s4 = inlined_call_operand.vmem [shape: bf16[32,128], index: 4, kind: input, shape index: {}]   ;;  %s881_s5 = inlined_call_operand.vmem [shape: bf16[32,128], index: 5, kind: input, shape index: {}]   ;;  %s882_s6 = inlined_call_operand.vmem [shape: f32[1,128], index: 6, kind: input, shape index: {}]   ;;  %s883_s7 = inlined_call_operand.vmem [shape: f32[8,32], index: 7, kind: output, shape index: {}]  }
   0x1   :  { %v731_v0 = vld [vmem:[%s878_s2] sm:$0xff]  ;;  %29 = vst.msk [vmem:[#allocation2] sm:$0xff] %vm28_vm0, %v677_v1  ;;  %30 = vst.msk [vmem:[#allocation2 + $0x8] sm:$0xff] %vm28_vm0, %v677_v1  ;;  %v754_v4 = vld [vmem:[%s879_s3 + $0x8] sm:$0xf]  ;;  %p445_p0 = scmp.le.s32.totalorder %s876_s0, 0 }
   0x2   :  { %31 = vst.msk [vmem:[#allocation2 + $0x10] sm:$0xff] %vm28_vm0, %v677_v1  ;;  %32 = vst.msk [vmem:[#allocation2 + $0x18] sm:$0xff] %vm28_vm0, %v677_v1  ;;  %v744_v2 = vld [vmem:[%s879_s3] sm:$0xf]  ;;  %v749_v3 = vld [vmem:[%s879_s3 + $0x4] sm:$0xf] }
   0x3   :  { %33 = vst.msk [vmem:[#allocation2 + $0x20] sm:$0xff] %vm28_vm0, %v677_v1  ;;  %34 = vst.msk [vmem:[#allocation2 + $0x28] sm:$0xff] %vm28_vm0, %v677_v1  ;;  %v759_v5 = vld [vmem:[%s879_s3 + $0xc] sm:$0xf]  ;;  %424 = sbr.rel (%p445_p0) target bundleno = 817 (0x331), region = 55  ;;  %s768_s14 = smov (!%p445_p0), 0  }
   0x4   :  { %35 = vst.msk [vmem:[#allocation2 + $0x30] sm:$0xff] %vm28_vm0, %v677_v1  ;;  %36 = vst.msk [vmem:[#allocation2 + $0x38] sm:$0xff] %vm28_vm0, %v677_v1 }
   0x8   :  { %v645_v6 = vmov 0.0   ;;  %v649_v7 = vmov 0.0  }
   0x9 LB: > { %v448_v8 = vcombine.low %v754_v4, %v759_v5  ;;  %v678_v9 = vmov 0.0   ;;  %v52_v10 = vpack.c.bf16 %v651_v7, %v651_v7  ;;  %v447_v11 = vcombine.low %v744_v2, %v749_v3  ;;  %s680_s3 = smov 64   ;;  %s446_s15 = sshll.u32 %s655_s14, 3  ;;  %s655_s14 = sphi %s768_s14, %s44_s14   ;;  %v651_v7 = vphi %v649_v7, %v135_v7   ;;  %v647_v6 = vphi %v645_v6, %v129_v6  }
   0xa   : > { %484 = vmatprep.subr.bf16.mxu0 %v678_v9  ;;  %vm679_vm1 = vmmov 0   ;;  %s50_s18 = scalar_lea.vmem %s877_s1, %s446_s15  ;;  %s681_s19 = smov 32  }
   0xb   : > { %485 = vmatpush3.bf16.msra.mxu0 %v448_v8  ;;  %488 = vmatprep.mubr.msk.bf16.mxu0 %vm679_vm1, %v678_v9  ;;  %v51_v13 = vld [vmem:[%s50_s18] sm:$0xff]  ;;  %s140_s20 = scalar_lea.vmem [#allocation2], %s446_s15  ;;  %s44_s14 = sadd.s32 1, %s655_s14  }
   0xc   : > { %486 = vmatprep.subr.bf16.mxu0 %v678_v9  ;;  %54 = vrot.lane.b32.xlu0 %v52_v10, %s680_s3  ;;  %p43_p1 = scmp.ge.s32.totalorder %s44_s14, %s876_s0 }
   0xf   : > { %487 = vmatpush3.bf16.msra.mxu0 %v447_v11 }
  0x7e   : > { %v55_v12 = vpop.permute.xlu0 %54 }
  0x7f   : > { %489 = vmatmul.mubr.msk.bf16.vlgmr.msra.gmra.mxu0 %vm28_vm0, %v55_v12 }
 0x13f   : > { %v105_v14 = vpop.f32.mrf.mxu0 }
 0x140   : > { %v111_v15 = vadd.f32 %v105_v14, %v51_v13 }
 0x141   : > { %v490_v16 = vpop.f32.mrf.mxu0 }
 0x142   : > { %591 = vtanh.f32 %v111_v15  ;;  %v450_v20 = vmul.f32 -1.442695, %v111_v15 }
 0x143   : > { %v108_v17 = vpop.f32.mrf.mxu0 }
 0x144   : > { %593 = vpow2.f32 %v450_v20 }
 0x145   : > { %v491_v18 = vpop.f32.mrf.mxu0 }
 0x14f   : > { %v592_v19 = vpop.eup %591 }
 0x150   : > { %121 = vrot.lane.b32.xlu0 %v592_v19, %s681_s19 }
 0x151   : > { %v594_v21 = vpop.eup %593 }
 0x152   : > { %v115_v22 = vadd.f32 1.0, %v594_v21 }
 0x154   : > { %595 = vrcp.f32 %v115_v22 }
 0x161   : > { %v596_v23 = vpop.eup %595 }
 0x162   : > { %v119_v26 = vmul.f32 %v647_v6, %v596_v23 }
 0x1c2   : > { %v122_v24 = vpop.permute.xlu0 %121 }
 0x1c3   : > { %v124_v25 = vmul.f32 %v596_v23, %v122_v24 }
 0x1c5   : > { %126 = vrot.lane.b32.xlu1 %v124_v25, %s681_s19 }
 0x237   : > { %v127_v27 = vpop.permute.xlu1 %126 }
 0x238   : > { %v129_v6 = vadd.f32 %v127_v27, %v119_v26  }
 0x23a   : > { %597 = vtanh.f32 %v129_v6 }
 0x247   : > { %v598_v28 = vpop.eup %597 }
 0x248   : > { %132 = vrot.lane.b32.xlu1 %v598_v28, %s681_s19 }
 0x2ba   : > { %v133_v29 = vpop.permute.xlu1 %132 }
 0x2bb   : > { %v135_v7 = vmul.f32 %v596_v23, %v133_v29  }
 0x2bd   : > { %137 = vrot.lane.b32.xlu0 %v135_v7, %s680_s3 }
 0x32c   :  { %46 = sbr.rel (!%p43_p1) target bundleno = 9 (0x9), region = 61 }
 0x32f   : > { %v138_v30 = vpop.permute.xlu0 %137 }
 0x330   : > { %141 = vst.msk [vmem:[%s140_s20] sm:$0xff] %vm28_vm0, %v138_v30 }
 0x331 PF:  { %v798_v31 = vld [vmem:[%s881_s5] sm:$0xf]  ;;  %v803_v32 = vld [vmem:[%s881_s5 + $0x4] sm:$0xf]  ;;  %v808_v33 = vld [vmem:[%s881_s5 + $0x8] sm:$0xf] }
 0x332   :  { %v813_v34 = vld [vmem:[%s881_s5 + $0xc] sm:$0xf]  ;;  %v600_v36 = vld [vmem:[%s880_s4] sm:$0xff]   ;;  %v828_v3 = vmov 0.0   ;;  %s840_s11 = smov (!%p445_p0), 0  }
 0x333   :  { %v599_v35 = vld [vmem:[%s880_s4 + $0x8] sm:$0xff]   ;;  %v451_v49 = vld [vmem:[%s882_s6] ss:$0 sm:$0xff] }
 0x334   :  { %492 = vmatprep.subr.bf16.mxu0 %v599_v35  ;;  %512 = vmatprep.subr.bf16.mxu1 %v599_v35 }
 0x335   :  { %493 = vmatpush3.bf16.msra.mxu0 %v599_v35  ;;  %514 = vmatpush3.bf16.msra.mxu1 %v599_v35 }
 0x336   :  { %494 = vmatprep.subr.bf16.mxu0 %v600_v36  ;;  %513 = vmatprep.subr.bf16.mxu1 %v600_v36 }
 0x337   :  { %v151_v37 = vld [vmem:[#allocation2] sm:$0xff]  ;;  %v152_v38 = vld [vmem:[#allocation2 + $0x8] sm:$0xff]  ;;  %v153_v42 = vld [vmem:[#allocation2 + $0x10] sm:$0xff] }
 0x338   :  { %v468_v39 = vpack.c.bf16 %v152_v38, %v151_v37  ;;  %v155_v40 = vld [vmem:[#allocation2 + $0x20] sm:$0xff]  ;;  %v156_v41 = vld [vmem:[#allocation2 + $0x28] sm:$0xff]  ;;  %v154_v44 = vld [vmem:[#allocation2 + $0x18] sm:$0xff] }
 0x339   :  { %v470_v43 = vpack.c.bf16 %v156_v41, %v155_v40  ;;  %v157_v45 = vld [vmem:[#allocation2 + $0x30] sm:$0xff]  ;;  %v158_v46 = vld [vmem:[#allocation2 + $0x38] sm:$0xff]  ;;  %v469_v47 = vpack.c.bf16 %v154_v44, %v153_v42  ;;  %495 = vmatpush3.bf16.msra.mxu0 %v600_v36  ;;  %515 = vmatpush3.bf16.msra.mxu1 %v600_v36 }
 0x33a   :  { %496 = vmatprep.mubr.msk.bf16.mxu0 %vm28_vm0, %v468_v39  ;;  %v471_v48 = vpack.c.bf16 %v158_v46, %v157_v45 }
 0x33b   :  { %500 = vmatprep.mubr.msk.bf16.mxu1 %vm28_vm0, %v470_v43 }
 0x33c   :  { %497 = vmatmul.mubr.msk.bf16.vlgmr.msra.gmra.mxu0 %vm28_vm0, %v469_v47  ;;  %501 = vmatmul.mubr.msk.bf16.vlgmr.msra.gmra.mxu1 %vm28_vm0, %v471_v48 }
 0x3fc   :  { %v498_v50 = vpop.f32.mrf.mxu0  ;;  %v502_v51 = vpop.f32.mrf.mxu1 }
 0x3fd   :  { %v260_v52 = vadd.f32 %v498_v50, %v451_v49  ;;  %v276_v53 = vadd.f32 %v502_v51, %v451_v49 }
 0x3fe   :  { %v251_v54 = vpop.f32.mrf.mxu0  ;;  %v267_v55 = vpop.f32.mrf.mxu1 }
 0x3ff   :  { %284 = vst [vmem:[#allocation3 + $0x10] sm:$0xff] %v260_v52  ;;  %288 = vst [vmem:[#allocation3 + $0x30] sm:$0xff] %v276_v53  ;;  %v252_v56 = vadd.f32 %v451_v49, %v251_v54  ;;  %v268_v57 = vadd.f32 %v451_v49, %v267_v55 }
 0x400   :  { %v499_v58 = vpop.f32.mrf.mxu0  ;;  %v503_v59 = vpop.f32.mrf.mxu1 }
 0x401   :  { %282 = vst [vmem:[#allocation3] sm:$0xff] %v252_v56  ;;  %286 = vst [vmem:[#allocation3 + $0x20] sm:$0xff] %v268_v57  ;;  %v263_v60 = vadd.f32 %v499_v58, %v451_v49  ;;  %v279_v61 = vadd.f32 %v503_v59, %v451_v49  ;;  %436 = sbr.rel (%p445_p0) target bundleno = 1725 (0x6bd), region = 66 }
 0x402   :  { %v254_v62 = vpop.f32.mrf.mxu0  ;;  %v270_v63 = vpop.f32.mrf.mxu1 }
 0x403   :  { %285 = vst [vmem:[#allocation3 + $0x18] sm:$0xff] %v263_v60  ;;  %289 = vst [vmem:[#allocation3 + $0x38] sm:$0xff] %v279_v61  ;;  %v255_v1 = vadd.f32 %v451_v49, %v254_v62  ;;  %v271_v2 = vadd.f32 %v451_v49, %v270_v63 }
 0x405   :  { %283 = vst [vmem:[#allocation3 + $0x8] sm:$0xff] %v255_v1  ;;  %287 = vst [vmem:[#allocation3 + $0x28] sm:$0xff] %v271_v2 }
 0x406   :  { %v834_v4 = vmov 0.0   ;;  %v836_v5 = vmov 0.0   ;;  %v838_v6 = vmov 0.0  }
 0x407 LB: > { %v465_v7 = vcombine.low %v808_v33, %v813_v34  ;;  %v682_v8 = vmov 0.0   ;;  %v302_v9 = vpack.c.bf16 %v667_v6, %v667_v6  ;;  %v464_v10 = vcombine.low %v798_v31, %v803_v32  ;;  %s684_s12 = smov 64   ;;  %s463_s13 = sshll.u32 %s671_s11, 3  ;;  %s671_s11 = sphi %s840_s11, %s293_s11   ;;  %v667_v6 = vphi %v838_v6, %v385_v6   ;;  %v663_v5 = vphi %v836_v5, %v379_v5   ;;  %v659_v4 = vphi %v834_v4, %v884_v4  }
 0x408   : > { %504 = vmatprep.subr.bf16.mxu0 %v682_v8  ;;  %vm683_vm2 = vmmov 0   ;;  %s300_s14 = scalar_lea.vmem [#allocation3], %s463_s13  ;;  %s685_s3 = smov 32   ;;  %v686_v22 = vmov 0   ;;  %v386_v23 = vstv %s671_s11 }
 0x409   : > { %505 = vmatpush3.bf16.msra.mxu0 %v465_v7  ;;  %508 = vmatprep.mubr.msk.bf16.mxu0 %vm683_vm2, %v682_v8  ;;  %vm387_vm3 = vcmp.eq.s32.totalorder %v731_v0, %v386_v23  ;;  %s293_s11 = sadd.s32 1, %s671_s11  }
 0x40a   : > { %506 = vmatprep.subr.bf16.mxu0 %v682_v8  ;;  %304 = vrot.lane.b32.xlu0 %v302_v9, %s684_s12  ;;  %v388_v27 = vsel %vm387_vm3, 1, %v686_v22  ;;  %p292_p2 = scmp.ge.s32.totalorder %s293_s11, %s876_s0 }
 0x40b   : > { %601 = vset.pattern.permute.xlu1 %v686_v22  ;;  %602 = vset.pattern.permute.xlu0 %v686_v22 }
 0x40c   : > { %v301_v12 = vld [vmem:[%s300_s14] sm:$0xff] }
 0x40d   : > { %507 = vmatpush3.bf16.msra.mxu0 %v464_v10 }
 0x47c   : > { %v305_v11 = vpop.permute.xlu0 %304 }
 0x47d   : > { %509 = vmatmul.mubr.msk.bf16.vlgmr.msra.gmra.mxu0 %vm28_vm0, %v305_v11 }
 0x53d   : > { %v355_v13 = vpop.f32.mrf.mxu0 }
 0x53e   : > { %v361_v14 = vadd.f32 %v355_v13, %v301_v12 }
 0x53f   : > { %v510_v15 = vpop.f32.mrf.mxu0 }
 0x540   : > { %603 = vtanh.f32 %v361_v14  ;;  %v467_v19 = vmul.f32 -1.442695, %v361_v14 }
 0x541   : > { %v358_v16 = vpop.f32.mrf.mxu0 }
 0x542   : > { %605 = vpow2.f32 %v467_v19 }
 0x543   : > { %v511_v17 = vpop.f32.mrf.mxu0 }
 0x54d   : > { %v604_v18 = vpop.eup %603 }
 0x54e   : > { %371 = vrot.lane.b32.xlu0 %v604_v18, %s685_s3 }
 0x54f   : > { %v606_v20 = vpop.eup %605 }
 0x550   : > { %v365_v21 = vadd.f32 1.0, %v606_v20 }
 0x552   : > { %607 = vrcp.f32 %v365_v21 }
 0x55f   : > { %v608_v24 = vpop.eup %607 }
 0x560   : > { %v369_v28 = vmul.f32 %v663_v5, %v608_v24 }
 0x5c0   : > { %v372_v25 = vpop.permute.xlu0 %371 }
 0x5c1   : > { %v374_v26 = vmul.f32 %v608_v24, %v372_v25 }
 0x5c3   : > { %376 = vrot.lane.b32.xlu1 %v374_v26, %s685_s3 }
 0x5c7   : > { %390 = vperm.xlu1 %601, %v388_v27  }
 0x635   : > { %v377_v29 = vpop.permute.xlu1 %376 }
 0x636   : > { %v379_v5 = vadd.f32 %v377_v29, %v369_v28  }
 0x638   : > { %609 = vtanh.f32 %v379_v5 }
 0x642   : > { %v391_v35 = vpop.permute.xlu1 %390 }
 0x643   : > { %vm392_vm4 = vcmp.eq.s32.totalorder %v391_v35, 1 }
 0x645   : > { %v610_v30 = vpop.eup %609 }
 0x646   : > { %382 = vrot.lane.b32.xlu0 %v610_v30, %s685_s3 }
 0x6b8   : > { %v383_v36 = vpop.permute.xlu0 %382  ;;  %295 = sbr.rel (!%p292_p2) target bundleno = 1031 (0x407), region = 72 }
 0x6b9   : > { %v385_v6 = vmul.f32 %v608_v24, %v383_v36  }
 0x6bb   : > { %v393_v37 = vsel %vm392_vm4, %v385_v6, %v659_v4  }
 0x6bc   : > { %v884_v4 = vmov %v393_v37  ;;  %v885_v3 = vmov (%p292_p2), %v393_v37 }
 0x6bd PF:  { %v394_v38 = vmul.f32 %v675_v3, %v675_v3  ;;  %s687_s17 = smov 64   ;;  %v675_v3 = vphi %v828_v3, %v885_v3  }
 0x6bf   :  { %396 = vrot.lane.b32.xlu0 %v394_v38, %s687_s17 }
 0x731   :  { %v397_v39 = vpop.permute.xlu0 %396 }
 0x732   :  { %v399_v40 = vsel %vm28_vm0, %v397_v39, 0.0 }
 0x733   :  { %400 = vadd.xlane.f32.xlu0 %v399_v40 }
 0x7bc   :  { %v401_v41 = vpop.xlane.xlu0 %400 }
 0x7bd   :  { %v402_v42 = vmax.f32 %v401_v41, 1e-24 }
 0x7bf   :  { %611 = vrsqrt.f32 %v402_v42 }
 0x7cc   :  { %v612_v43 = vpop.eup %611 }
 0x7cd   :  { %v404_v44 = vmul.f32 %v675_v3, %v612_v43 }
 0x7cf   :  { %406 = vrot.lane.b32.xlu1 %v404_v44, %s687_s17 }
 0x841   :  { %v407_v45 = vpop.permute.xlu1 %406 }
 0x842   :  { %409 = vst.msk [vmem:[%s883_s7] sm:$0xff] %vm28_vm0, %v407_v45 }

</bundles_post_ra>
